<compile_context>
chip_gen: v6e
topology: v6e:2x2x1
jax: 0.10.0
libtpu: 0.0.40
codegen_flags: <defaults>
</compile_context>

<pallas_src>
import functools
import math

import jax
import jax.numpy as jnp
from jax import lax
from jax.experimental import pallas as pl
from jax.experimental.pallas import tpu as pltpu


def _erf(x):
    # Abramowitz & Stegun 7.1.26 polynomial erf (|err| <= 1.5e-7); uses only ops
    # guaranteed to lower on Mosaic (exp / mul / add / abs / where).
    a1, a2, a3, a4, a5 = 0.254829592, -0.284496736, 1.421413741, -1.453152027, 1.061405429
    p = 0.3275911
    sgn = jnp.where(x >= 0.0, 1.0, -1.0)
    ax = jnp.abs(x)
    t = 1.0 / (1.0 + p * ax)
    poly = ((((a5 * t + a4) * t + a3) * t + a2) * t + a1) * t
    return sgn * (1.0 - poly * jnp.exp(-ax * ax))


def _gelu_exact(x):
    # matches torch.nn.functional.gelu default (erf-based)
    return 0.5 * x * (1.0 + _erf(x * (1.0 / math.sqrt(2.0))))


def _split_heads(mat, heads, c):
    # (R, H*C) -> (H, R, C) via static lane slices (avoids lane-splitting reshapes).
    return jnp.stack([mat[:, h * c:(h + 1) * c] for h in range(heads)], axis=0)


def gtn_layer_kernel(x_full_ref, x_tile_ref, adj_ref, e_ref,
                     w_kv_ref, b_kv_ref, w_qs_ref, b_qs_ref,
                     gamma_ref, beta_ref, o_ref, *, heads, out_dim):
    H, C = heads, out_dim
    f32, bf16 = jnp.float32, jnp.bfloat16

    x_full = x_full_ref[...].astype(bf16)     # (N, F)  source-node features (keys/values)
    x_tile = x_tile_ref[...].astype(bf16)     # (TM, F) target-node rows of this tile
    adj = adj_ref[...]                        # (TM, N) f32 mask: adj[i,j]=1 if edge j -> i
    e = e_ref[...]                            # (H, TM, N, C) bf16 dense lin_edge(edge_attr)
    gamma = gamma_ref[...]                    # (1, C)
    beta = beta_ref[...]                      # (1, C)

    # Fused projections: two wide, lane-dense MXU matmuls (bf16 operands, f32 acc).
    kv = jnp.dot(x_full, w_kv_ref[...], preferred_element_type=f32) + b_kv_ref[...]  # (N, 2HC)
    qs = jnp.dot(x_tile, w_qs_ref[...], preferred_element_type=f32) + b_qs_ref[...]  # (TM, HC+C)

    k = _split_heads(kv[:, :H * C], H, C)      # (H, N, C)
    v = _split_heads(kv[:, H * C:], H, C)      # (H, N, C)
    q = _split_heads(qs[:, :H * C], H, C)      # (H, TM, C)  (1/sqrt(C) pre-folded into Wq/bq)
    skip = qs[:, H * C:]                       # (TM, C)     root / skip connection

    # scores_hij = q_hi . (k_hj + e_hij)  (scale folded into q); bf16 MXU, f32 accumulation
    qb = q.astype(bf16)
    sc = jnp.einsum('hic,hjc->hij', qb, k.astype(bf16),
                    preferred_element_type=f32)                       # (H, TM, N) MXU
    sc = sc + jnp.sum((qb[:, :, None, :] * e).astype(f32), axis=-1)   # bf16 VPU mul + f32 reduce

    # masked segment softmax over incoming edges j (lane axis)
    neg = (adj - 1.0) * 1e30                          # additive bias: 0 on edges, -1e30 off
    sm = sc + neg[None]
    m = jnp.max(sm, axis=-1, keepdims=True)
    p_un = jnp.exp(sm - m) * adj[None]
    denom = jnp.sum(p_un, axis=-1, keepdims=True)
    denom = jnp.where(denom > 0.0, denom, 1.0)        # isolated target nodes -> alpha = 0
    alpha = p_un * pl.reciprocal(denom, approx=True)  # (H, TM, N)

    # out_hi = sum_j alpha_hij * (v_hj + e_hij); concat=False -> mean over heads
    ab = alpha.astype(bf16)
    out_v = jnp.einsum('hij,hjc->hic', ab, v.astype(bf16),
                       preferred_element_type=f32)                    # (H, TM, C) MXU
    out_e = jnp.sum((ab[..., None] * e).astype(f32), axis=2)          # (H, TM, C) VPU + reduce
    out = jnp.sum(out_v + out_e, axis=0) * (1.0 / float(H))           # (TM, C)
    out = out + skip

    # shared LayerNorm (eps = 1e-5, torch default) + exact GELU
    mu = jnp.mean(out, axis=-1, keepdims=True)
    var = jnp.mean((out - mu) ** 2, axis=-1, keepdims=True)
    y = (out - mu) * lax.rsqrt(var + 1e-5)
    y = y * gamma + beta
    o_ref[...] = _gelu_exact(y)


def gtn_layer_forward(x, adj, layer_args, ln_gamma, ln_beta, *, heads, out_dim, tile_m=None):
    e_dense, w_kv, b_kv, w_qs, b_qs = layer_args
    n_nodes, f_in = x.shape
    H, C = heads, out_dim
    tm = min(n_nodes, 128) if tile_m is None else tile_m
    assert n_nodes % tm == 0, "demo requires TM | N"
    grid = (n_nodes // tm,)
    n_kv = 2 * H * C
    n_qs = H * C + C

    kernel = functools.partial(gtn_layer_kernel, heads=heads, out_dim=out_dim)
    return pl.pallas_call(
        kernel,
        out_shape=jax.ShapeDtypeStruct((n_nodes, out_dim), jnp.float32),
        grid=grid,
        in_specs=[
            pl.BlockSpec((n_nodes, f_in), lambda i: (0, 0)),             # x (full, keys/values)
            pl.BlockSpec((tm, f_in), lambda i: (i, 0)),                  # x row tile (queries/skip)
            pl.BlockSpec((tm, n_nodes), lambda i: (i, 0)),               # adjacency row tile
            pl.BlockSpec((H, tm, n_nodes, C), lambda i: (0, i, 0, 0)),   # bf16 edge slab, streamed
            pl.BlockSpec((f_in, n_kv), lambda i: (0, 0)),                # [Wk | Wv]
            pl.BlockSpec((1, n_kv), lambda i: (0, 0)),                   # [bk | bv]
            pl.BlockSpec((f_in, n_qs), lambda i: (0, 0)),                # [Wq/sqrt(C) | Wskip]
            pl.BlockSpec((1, n_qs), lambda i: (0, 0)),                   # [bq/sqrt(C) | bskip]
            pl.BlockSpec((1, C), lambda i: (0, 0)),                      # LN gamma
            pl.BlockSpec((1, C), lambda i: (0, 0)),                      # LN beta
        ],
        out_specs=pl.BlockSpec((tm, C), lambda i: (i, 0)),
        compiler_params=pltpu.CompilerParams(
            dimension_semantics=("parallel",),
            vmem_limit_bytes=32 * 1024 * 1024),
    )(x, x, adj, e_dense, w_kv, b_kv, w_qs, b_qs, ln_gamma, ln_beta)


def atom_gtn_forward(x, adj, layer_args_list, ln_gamma, ln_beta, *, heads, out_dim):
    # Layer l+1 reads all rows of layer l, so layers are separate launches (grid rows parallel).
    for la in layer_args_list:
        x = gtn_layer_forward(x, adj, la, ln_gamma, ln_beta, heads=heads, out_dim=out_dim)
    return x


# ------------------------- host-side parameter / graph glue -------------------------

def densify_edges(edge_index, edge_attr, we, n_nodes, heads, out_dim):
    # lin_edge does not depend on x -> hoisted out of the kernel entirely; shipped bf16.
    # Assumes at most one edge per (dst, src) pair (parallel edges would be collapsed).
    src, dst = edge_index[0], edge_index[1]
    e_proj = (edge_attr @ we).reshape(-1, heads, out_dim)                   # (E, H, C)
    dense = jnp.zeros((n_nodes, n_nodes, heads, out_dim), jnp.float32)
    dense = dense.at[dst, src].set(e_proj)                                  # (N, N, H, C)
    return jnp.transpose(dense, (2, 0, 1, 3)).astype(jnp.bfloat16)          # (H, N, N, C) bf16


def prepare_layer_args(conv_params, e_dense, out_dim):
    scale = 1.0 / math.sqrt(out_dim)
    w_kv = jnp.concatenate([conv_params["wk"], conv_params["wv"]], axis=1).astype(jnp.bfloat16)
    b_kv = jnp.concatenate([conv_params["bk"], conv_params["bv"]], axis=1).astype(jnp.float32)
    w_qs = jnp.concatenate([conv_params["wq"] * scale, conv_params["wskip"]],
                           axis=1).astype(jnp.bfloat16)
    b_qs = jnp.concatenate([conv_params["bq"] * scale, conv_params["bskip"]],
                           axis=1).astype(jnp.float32)
    return (e_dense, w_kv, b_kv, w_qs, b_qs)


def init_params(key, num_feature, e_dim, out_dim, heads):
    H, C = heads, out_dim

    def lin(k, fan_in, fan_out, bias=True):
        k1, k2 = jax.random.split(k)
        w = jax.random.normal(k1, (fan_in, fan_out), jnp.float32) / math.sqrt(fan_in)
        b = (jax.random.normal(k2, (1, fan_out), jnp.float32) * 0.05) if bias else None
        return w, b

    params = {}
    in_dim = num_feature
    keys = jax.random.split(key, 4)
    for li, name in enumerate(("conv1", "conv2", "conv3")):
        kq, kk, kv, ke_, ks = jax.random.split(keys[li], 5)
        wq, bq = lin(kq, in_dim, H * C)
        wk, bk = lin(kk, in_dim, H * C)
        wv, bv = lin(kv, in_dim, H * C)
        we, _ = lin(ke_, e_dim, H * C, bias=False)     # lin_edge has no bias in PyG
        wskip, bskip = lin(ks, in_dim, C)
        params[name] = dict(wq=wq, bq=bq, wk=wk, bk=bk, wv=wv, bv=bv,
                            we=we, wskip=wskip, bskip=bskip)
        in_dim = C
    kg, kb = jax.random.split(keys[3])
    params["ln"] = dict(
        gamma=1.0 + 0.1 * jax.random.normal(kg, (1, C), jnp.float32),
        beta=0.1 * jax.random.normal(kb, (1, C), jnp.float32))
    return params


if __name__ == "__main__":
    N, NUM_FEATURE, E_DIM, OUT_DIM, HEADS = 8, 16, 8, 32, 2
    DROPOUT = 0.0  # inference

    key = jax.random.PRNGKey(0)
    kx, ke, kp = jax.random.split(key, 3)
    x = jax.random.normal(kx, (N, NUM_FEATURE), jnp.float32)

    # deterministic directed graph: node i receives edges from (i+1)%N and (i+3)%N
    src = jnp.array([(i + 1) % N for i in range(N)] + [(i + 3) % N for i in range(N)],
                    dtype=jnp.int32)
    dst = jnp.array(list(range(N)) * 2, dtype=jnp.int32)
    edge_index = jnp.stack([src, dst])                       # (2, E), PyG convention
    E = edge_index.shape[1]
    edge_attr = jax.random.normal(ke, (E, E_DIM), jnp.float32)

    # dense adjacency mask (target node i on sublanes, source node j on lanes)
    adj = jnp.zeros((N, N), jnp.float32).at[dst, src].set(1.0)

    params = init_params(kp, NUM_FEATURE, E_DIM, OUT_DIM, HEADS)

    layer_args_list = []
    for name in ("conv1", "conv2", "conv3"):
        e_dense = densify_edges(edge_index, edge_attr, params[name]["we"], N, HEADS, OUT_DIM)
        layer_args_list.append(prepare_layer_args(params[name], e_dense, OUT_DIM))

    out = atom_gtn_forward(x, adj, layer_args_list,
                           params["ln"]["gamma"], params["ln"]["beta"],
                           heads=HEADS, out_dim=OUT_DIM)
    out = jax.block_until_ready(out)

    assert out.shape == (N, OUT_DIM)
    assert bool(jnp.all(jnp.isfinite(out)))
    print("KERNEL_OK")
</pallas_src>

<mosaic_0001>
module attributes {stable_mosaic.version = 11 : i64} {
  func.func @gtn_layer_kernel(%arg0: i32, %arg1: memref<8x16xf32, #tpu.memory_space<vmem>>, %arg2: memref<8x16xf32, #tpu.memory_space<vmem>>, %arg3: memref<8x8xf32, #tpu.memory_space<vmem>>, %arg4: memref<2x8x8x32xbf16, #tpu.memory_space<vmem>>, %arg5: memref<16x128xbf16, #tpu.memory_space<vmem>>, %arg6: memref<1x128xf32, #tpu.memory_space<vmem>>, %arg7: memref<16x96xbf16, #tpu.memory_space<vmem>>, %arg8: memref<1x96xf32, #tpu.memory_space<vmem>>, %arg9: memref<1x32xf32, #tpu.memory_space<vmem>>, %arg10: memref<1x32xf32, #tpu.memory_space<vmem>>, %arg11: memref<8x32xf32, #tpu.memory_space<vmem>>) attributes {dimension_semantics = [#tpu.dimension_semantics<parallel>], iteration_bounds = array<i64: 1>, scalar_prefetch = 0 : i64, scratch_operands = 0 : i64, tpu.core_type = #tpu.core_type<tc>, window_params = [{pipeline_mode = #tpu.pipeline_mode<synchronous>, transform_indices = @transform_0, window_bounds = array<i64: 8, 16>}, {transform_indices = @transform_1, window_bounds = array<i64: 8, 16>}, {transform_indices = @transform_2, window_bounds = array<i64: 8, 8>}, {transform_indices = @transform_3, window_bounds = array<i64: 2, 8, 8, 32>}, {pipeline_mode = #tpu.pipeline_mode<synchronous>, transform_indices = @transform_4, window_bounds = array<i64: 16, 128>}, {pipeline_mode = #tpu.pipeline_mode<synchronous>, transform_indices = @transform_5, window_bounds = array<i64: 1, 128>}, {pipeline_mode = #tpu.pipeline_mode<synchronous>, transform_indices = @transform_6, window_bounds = array<i64: 16, 96>}, {pipeline_mode = #tpu.pipeline_mode<synchronous>, transform_indices = @transform_7, window_bounds = array<i64: 1, 96>}, {pipeline_mode = #tpu.pipeline_mode<synchronous>, transform_indices = @transform_8, window_bounds = array<i64: 1, 32>}, {pipeline_mode = #tpu.pipeline_mode<synchronous>, transform_indices = @transform_9, window_bounds = array<i64: 1, 32>}, {transform_indices = @transform_10, window_bounds = array<i64: 8, 32>}]} {
    %c0 = arith.constant 0 : index
    %c0_0 = arith.constant 0 : index
    %0 = vector.load %arg1[%c0, %c0_0] : memref<8x16xf32, #tpu.memory_space<vmem>>, vector<8x16xf32>
    %1 = arith.truncf %0 : vector<8x16xf32> to vector<8x16xbf16>
    %c0_1 = arith.constant 0 : index
    %c0_2 = arith.constant 0 : index
    %2 = vector.load %arg2[%c0_1, %c0_2] : memref<8x16xf32, #tpu.memory_space<vmem>>, vector<8x16xf32>
    %3 = arith.truncf %2 : vector<8x16xf32> to vector<8x16xbf16>
    %c0_3 = arith.constant 0 : index
    %c0_4 = arith.constant 0 : index
    %4 = vector.load %arg3[%c0_3, %c0_4] : memref<8x8xf32, #tpu.memory_space<vmem>>, vector<8x8xf32>
    %c0_5 = arith.constant 0 : index
    %c0_6 = arith.constant 0 : index
    %c0_7 = arith.constant 0 : index
    %c0_8 = arith.constant 0 : index
    %5 = vector.load %arg4[%c0_5, %c0_6, %c0_7, %c0_8] : memref<2x8x8x32xbf16, #tpu.memory_space<vmem>>, vector<2x8x8x32xbf16>
    %c0_9 = arith.constant 0 : index
    %c0_10 = arith.constant 0 : index
    %6 = vector.load %arg9[%c0_9, %c0_10] : memref<1x32xf32, #tpu.memory_space<vmem>>, vector<1x32xf32>
    %c0_11 = arith.constant 0 : index
    %c0_12 = arith.constant 0 : index
    %7 = vector.load %arg10[%c0_11, %c0_12] : memref<1x32xf32, #tpu.memory_space<vmem>>, vector<1x32xf32>
    %c0_13 = arith.constant 0 : index
    %c0_14 = arith.constant 0 : index
    %8 = vector.load %arg5[%c0_13, %c0_14] : memref<16x128xbf16, #tpu.memory_space<vmem>>, vector<16x128xbf16>
    %cst = arith.constant dense<0.000000e+00> : vector<8x128xf32>
    %9 = tpu.matmul %1, %8, %cst {dimension_numbers = #tpu.dot_dimension_numbers<[1], [0], [0], [1], [0, 0, 1, 1], [], []>} : vector<8x16xbf16>, vector<16x128xbf16>, vector<8x128xf32> -> vector<8x128xf32>
    %c0_15 = arith.constant 0 : index
    %c0_16 = arith.constant 0 : index
    %10 = vector.load %arg6[%c0_15, %c0_16] : memref<1x128xf32, #tpu.memory_space<vmem>>, vector<1x128xf32>
    %11 = vector.broadcast %10 : vector<1x128xf32> to vector<8x128xf32>
    %12 = arith.addf %9, %11 : vector<8x128xf32>
    %c0_17 = arith.constant 0 : index
    %c0_18 = arith.constant 0 : index
    %13 = vector.load %arg7[%c0_17, %c0_18] : memref<16x96xbf16, #tpu.memory_space<vmem>>, vector<16x96xbf16>
    %cst_19 = arith.constant dense<0.000000e+00> : vector<8x96xf32>
    %14 = tpu.matmul %3, %13, %cst_19 {dimension_numbers = #tpu.dot_dimension_numbers<[1], [0], [0], [1], [0, 0, 1, 1], [], []>} : vector<8x16xbf16>, vector<16x96xbf16>, vector<8x96xf32> -> vector<8x96xf32>
    %c0_20 = arith.constant 0 : index
    %c0_21 = arith.constant 0 : index
    %15 = vector.load %arg8[%c0_20, %c0_21] : memref<1x96xf32, #tpu.memory_space<vmem>>, vector<1x96xf32>
    %16 = vector.broadcast %15 : vector<1x96xf32> to vector<8x96xf32>
    %17 = arith.addf %14, %16 : vector<8x96xf32>
    %18 = vector.extract_strided_slice %12 {offsets = [0, 0], sizes = [8, 64], strides = [1, 1]} : vector<8x128xf32> to vector<8x64xf32>
    %19 = vector.extract_strided_slice %18 {offsets = [0, 0], sizes = [8, 32], strides = [1, 1]} : vector<8x64xf32> to vector<8x32xf32>
    %20 = vector.extract_strided_slice %18 {offsets = [0, 32], sizes = [8, 32], strides = [1, 1]} : vector<8x64xf32> to vector<8x32xf32>
    %21 = vector.shape_cast %19 : vector<8x32xf32> to vector<1x8x32xf32>
    %22 = vector.shape_cast %20 : vector<8x32xf32> to vector<1x8x32xf32>
    %23 = tpu.concatenate %21, %22 in 0 : vector<1x8x32xf32>, vector<1x8x32xf32> -> vector<2x8x32xf32>
    %24 = vector.extract_strided_slice %12 {offsets = [0, 64], sizes = [8, 64], strides = [1, 1]} : vector<8x128xf32> to vector<8x64xf32>
    %25 = vector.extract_strided_slice %24 {offsets = [0, 0], sizes = [8, 32], strides = [1, 1]} : vector<8x64xf32> to vector<8x32xf32>
    %26 = vector.extract_strided_slice %24 {offsets = [0, 32], sizes = [8, 32], strides = [1, 1]} : vector<8x64xf32> to vector<8x32xf32>
    %27 = vector.shape_cast %25 : vector<8x32xf32> to vector<1x8x32xf32>
    %28 = vector.shape_cast %26 : vector<8x32xf32> to vector<1x8x32xf32>
    %29 = tpu.concatenate %27, %28 in 0 : vector<1x8x32xf32>, vector<1x8x32xf32> -> vector<2x8x32xf32>
    %30 = vector.extract_strided_slice %17 {offsets = [0, 0], sizes = [8, 64], strides = [1, 1]} : vector<8x96xf32> to vector<8x64xf32>
    %31 = vector.extract_strided_slice %30 {offsets = [0, 0], sizes = [8, 32], strides = [1, 1]} : vector<8x64xf32> to vector<8x32xf32>
    %32 = vector.extract_strided_slice %30 {offsets = [0, 32], sizes = [8, 32], strides = [1, 1]} : vector<8x64xf32> to vector<8x32xf32>
    %33 = vector.shape_cast %31 : vector<8x32xf32> to vector<1x8x32xf32>
    %34 = vector.shape_cast %32 : vector<8x32xf32> to vector<1x8x32xf32>
    %35 = tpu.concatenate %33, %34 in 0 : vector<1x8x32xf32>, vector<1x8x32xf32> -> vector<2x8x32xf32>
    %36 = vector.extract_strided_slice %17 {offsets = [0, 64], sizes = [8, 32], strides = [1, 1]} : vector<8x96xf32> to vector<8x32xf32>
    %37 = arith.truncf %35 : vector<2x8x32xf32> to vector<2x8x32xbf16>
    %38 = arith.truncf %23 : vector<2x8x32xf32> to vector<2x8x32xbf16>
    "tpu.trace_start"() <{level = 10 : i32, message = "hic,hjc->hij"}> : () -> ()
    %cst_22 = arith.constant dense<0.000000e+00> : vector<2x8x8xf32>
    %39 = tpu.matmul %37, %38, %cst_22 {dimension_numbers = #tpu.dot_dimension_numbers<[2], [2], [1], [1], [0, 0, 0, 1, 1, 1], [0], [0]>} : vector<2x8x32xbf16>, vector<2x8x32xbf16>, vector<2x8x8xf32> -> vector<2x8x8xf32>
    "tpu.trace_stop"() : () -> ()
    %40 = vector.shape_cast %37 : vector<2x8x32xbf16> to vector<2x8x1x32xbf16>
    %41 = vector.broadcast %40 : vector<2x8x1x32xbf16> to vector<2x8x8x32xbf16>
    %42 = arith.mulf %41, %5 : vector<2x8x8x32xbf16>
    %43 = arith.extf %42 : vector<2x8x8x32xbf16> to vector<2x8x8x32xf32>
    %cst_23 = arith.constant dense<0.000000e+00> : vector<2x8x8xf32>
    %44 = vector.multi_reduction <add>, %43, %cst_23 [3] : vector<2x8x8x32xf32> to vector<2x8x8xf32>
    %45 = arith.addf %39, %44 : vector<2x8x8xf32>
    %cst_24 = arith.constant 1.000000e+00 : f32
    %46 = vector.broadcast %cst_24 : f32 to vector<8x8xf32>
    %47 = arith.subf %4, %46 : vector<8x8xf32>
    %cst_25 = arith.constant 1.000000e+30 : f32
    %48 = vector.broadcast %cst_25 : f32 to vector<8x8xf32>
    %49 = arith.mulf %47, %48 : vector<8x8xf32>
    %50 = vector.shape_cast %49 : vector<8x8xf32> to vector<1x8x8xf32>
    %51 = vector.broadcast %50 : vector<1x8x8xf32> to vector<2x8x8xf32>
    %52 = arith.addf %45, %51 : vector<2x8x8xf32>
    %cst_26 = arith.constant dense<0xFF800000> : vector<2x8xf32>
    %53 = vector.multi_reduction <maximumf>, %52, %cst_26 [2] : vector<2x8x8xf32> to vector<2x8xf32>
    %54 = vector.shape_cast %53 : vector<2x8xf32> to vector<2x8x1xf32>
    %55 = vector.broadcast %54 : vector<2x8x1xf32> to vector<2x8x8xf32>
    %56 = arith.subf %52, %55 : vector<2x8x8xf32>
    %57 = math.exp %56 : vector<2x8x8xf32>
    %58 = vector.shape_cast %4 : vector<8x8xf32> to vector<1x8x8xf32>
    %59 = vector.broadcast %58 : vector<1x8x8xf32> to vector<2x8x8xf32>
    %60 = arith.mulf %57, %59 : vector<2x8x8xf32>
    %cst_27 = arith.constant dense<0.000000e+00> : vector<2x8xf32>
    %61 = vector.multi_reduction <add>, %60, %cst_27 [2] : vector<2x8x8xf32> to vector<2x8xf32>
    %62 = vector.shape_cast %61 : vector<2x8xf32> to vector<2x8x1xf32>
    %cst_28 = arith.constant 0.000000e+00 : f32
    %63 = vector.broadcast %cst_28 : f32 to vector<2x8x1xf32>
    %64 = arith.cmpf ogt, %62, %63 : vector<2x8x1xf32>
    %cst_29 = arith.constant 1.000000e+00 : f32
    %65 = vector.broadcast %cst_29 : f32 to vector<2x8x1xf32>
    %66 = arith.select %64, %62, %65 : vector<2x8x1xi1>, vector<2x8x1xf32>
    %67 = tpu.reciprocal %66 {approx = true} : vector<2x8x1xf32> -> vector<2x8x1xf32>
    %68 = vector.broadcast %67 : vector<2x8x1xf32> to vector<2x8x8xf32>
    %69 = arith.mulf %60, %68 : vector<2x8x8xf32>
    %70 = arith.truncf %69 : vector<2x8x8xf32> to vector<2x8x8xbf16>
    %71 = arith.truncf %29 : vector<2x8x32xf32> to vector<2x8x32xbf16>
    "tpu.trace_start"() <{level = 10 : i32, message = "hij,hjc->hic"}> : () -> ()
    %cst_30 = arith.constant dense<0.000000e+00> : vector<2x8x32xf32>
    %72 = tpu.matmul %70, %71, %cst_30 {dimension_numbers = #tpu.dot_dimension_numbers<[2], [1], [1], [2], [0, 0, 0, 1, 1, 2], [0], [0]>} : vector<2x8x8xbf16>, vector<2x8x32xbf16>, vector<2x8x32xf32> -> vector<2x8x32xf32>
    "tpu.trace_stop"() : () -> ()
    %73 = vector.shape_cast %70 : vector<2x8x8xbf16> to vector<2x8x8x1xbf16>
    %74 = vector.broadcast %73 : vector<2x8x8x1xbf16> to vector<2x8x8x32xbf16>
    %75 = arith.mulf %74, %5 : vector<2x8x8x32xbf16>
    %76 = arith.extf %75 : vector<2x8x8x32xbf16> to vector<2x8x8x32xf32>
    %cst_31 = arith.constant dense<0.000000e+00> : vector<2x8x32xf32>
    %77 = vector.multi_reduction <add>, %76, %cst_31 [2] : vector<2x8x8x32xf32> to vector<2x8x32xf32>
    %78 = arith.addf %72, %77 : vector<2x8x32xf32>
    %cst_32 = arith.constant dense<0.000000e+00> : vector<8x32xf32>
    %79 = vector.multi_reduction <add>, %78, %cst_32 [0] : vector<2x8x32xf32> to vector<8x32xf32>
    %cst_33 = arith.constant 5.000000e-01 : f32
    %80 = vector.broadcast %cst_33 : f32 to vector<8x32xf32>
    %81 = arith.mulf %79, %80 : vector<8x32xf32>
    %82 = arith.addf %81, %36 : vector<8x32xf32>
    %cst_34 = arith.constant dense<0.000000e+00> : vector<8xf32>
    %83 = vector.multi_reduction <add>, %82, %cst_34 [1] : vector<8x32xf32> to vector<8xf32>
    %84 = vector.shape_cast %83 : vector<8xf32> to vector<8x1xf32>
    %cst_35 = arith.constant 3.200000e+01 : f32
    %85 = vector.broadcast %cst_35 : f32 to vector<8x1xf32>
    %86 = arith.divf %84, %85 : vector<8x1xf32>
    %87 = vector.broadcast %86 : vector<8x1xf32> to vector<8x32xf32>
    %88 = arith.subf %82, %87 : vector<8x32xf32>
    %89 = arith.mulf %88, %88 : vector<8x32xf32>
    %cst_36 = arith.constant dense<0.000000e+00> : vector<8xf32>
    %90 = vector.multi_reduction <add>, %89, %cst_36 [1] : vector<8x32xf32> to vector<8xf32>
    %91 = vector.shape_cast %90 : vector<8xf32> to vector<8x1xf32>
    %cst_37 = arith.constant 3.200000e+01 : f32
    %92 = vector.broadcast %cst_37 : f32 to vector<8x1xf32>
    %93 = arith.divf %91, %92 : vector<8x1xf32>
    %94 = vector.broadcast %86 : vector<8x1xf32> to vector<8x32xf32>
    %95 = arith.subf %82, %94 : vector<8x32xf32>
    %cst_38 = arith.constant 9.99999974E-6 : f32
    %96 = vector.broadcast %cst_38 : f32 to vector<8x1xf32>
    %97 = arith.addf %93, %96 : vector<8x1xf32>
    %98 = math.rsqrt %97 : vector<8x1xf32>
    %99 = vector.broadcast %98 : vector<8x1xf32> to vector<8x32xf32>
    %100 = arith.mulf %95, %99 : vector<8x32xf32>
    %101 = vector.broadcast %6 : vector<1x32xf32> to vector<8x32xf32>
    %102 = arith.mulf %100, %101 : vector<8x32xf32>
    %103 = vector.broadcast %7 : vector<1x32xf32> to vector<8x32xf32>
    %104 = arith.addf %102, %103 : vector<8x32xf32>
    %cst_39 = arith.constant 5.000000e-01 : f32
    %105 = vector.broadcast %cst_39 : f32 to vector<8x32xf32>
    %106 = arith.mulf %105, %104 : vector<8x32xf32>
    %cst_40 = arith.constant 0.707106769 : f32
    %107 = vector.broadcast %cst_40 : f32 to vector<8x32xf32>
    %108 = arith.mulf %104, %107 : vector<8x32xf32>
    %cst_41 = arith.constant 0.000000e+00 : f32
    %109 = vector.broadcast %cst_41 : f32 to vector<8x32xf32>
    %110 = arith.cmpf oge, %108, %109 : vector<8x32xf32>
    %cst_42 = arith.constant 1.000000e+00 : f32
    %cst_43 = arith.constant -1.000000e+00 : f32
    %111 = vector.broadcast %cst_42 : f32 to vector<8x32xf32>
    %112 = vector.broadcast %cst_43 : f32 to vector<8x32xf32>
    %113 = arith.select %110, %111, %112 : vector<8x32xi1>, vector<8x32xf32>
    %114 = math.absf %108 : vector<8x32xf32>
    %cst_44 = arith.constant 0.327591091 : f32
    %115 = vector.broadcast %cst_44 : f32 to vector<8x32xf32>
    %116 = arith.mulf %115, %114 : vector<8x32xf32>
    %cst_45 = arith.constant 1.000000e+00 : f32
    %117 = vector.broadcast %cst_45 : f32 to vector<8x32xf32>
    %118 = arith.addf %117, %116 : vector<8x32xf32>
    %cst_46 = arith.constant 1.000000e+00 : f32
    %119 = vector.broadcast %cst_46 : f32 to vector<8x32xf32>
    %120 = arith.divf %119, %118 : vector<8x32xf32>
    %cst_47 = arith.constant 1.06140542 : f32
    %121 = vector.broadcast %cst_47 : f32 to vector<8x32xf32>
    %122 = arith.mulf %121, %120 : vector<8x32xf32>
    %cst_48 = arith.constant -1.45315206 : f32
    %123 = vector.broadcast %cst_48 : f32 to vector<8x32xf32>
    %124 = arith.addf %122, %123 : vector<8x32xf32>
    %125 = arith.mulf %124, %120 : vector<8x32xf32>
    %cst_49 = arith.constant 1.42141378 : f32
    %126 = vector.broadcast %cst_49 : f32 to vector<8x32xf32>
    %127 = arith.addf %125, %126 : vector<8x32xf32>
    %128 = arith.mulf %127, %120 : vector<8x32xf32>
    %cst_50 = arith.constant -0.284496725 : f32
    %129 = vector.broadcast %cst_50 : f32 to vector<8x32xf32>
    %130 = arith.addf %128, %129 : vector<8x32xf32>
    %131 = arith.mulf %130, %120 : vector<8x32xf32>
    %cst_51 = arith.constant 0.254829586 : f32
    %132 = vector.broadcast %cst_51 : f32 to vector<8x32xf32>
    %133 = arith.addf %131, %132 : vector<8x32xf32>
    %134 = arith.mulf %133, %120 : vector<8x32xf32>
    %cst_52 = arith.constant 0.000000e+00 : f32
    %135 = vector.broadcast %cst_52 : f32 to vector<8x32xf32>
    %136 = arith.subf %135, %114 : vector<8x32xf32>
    %137 = arith.mulf %136, %114 : vector<8x32xf32>
    %138 = math.exp %137 : vector<8x32xf32>
    %139 = arith.mulf %134, %138 : vector<8x32xf32>
    %cst_53 = arith.constant 1.000000e+00 : f32
    %140 = vector.broadcast %cst_53 : f32 to vector<8x32xf32>
    %141 = arith.subf %140, %139 : vector<8x32xf32>
    %142 = arith.mulf %113, %141 : vector<8x32xf32>
    %cst_54 = arith.constant 1.000000e+00 : f32
    %143 = vector.broadcast %cst_54 : f32 to vector<8x32xf32>
    %144 = arith.addf %143, %142 : vector<8x32xf32>
    %145 = arith.mulf %106, %144 : vector<8x32xf32>
    %c0_55 = arith.constant 0 : index
    %c0_56 = arith.constant 0 : index
    %146 = vector.load %arg11[%c0_55, %c0_56] : memref<8x32xf32, #tpu.memory_space<vmem>>, vector<8x32xf32>
    tpu.vector_store %arg11[%c0_55, %c0_56], %145 {strides = array<i32>} : memref<8x32xf32, #tpu.memory_space<vmem>>, vector<8x32xf32>,
    return
  }
  func.func @transform_0(%arg0: i32) -> (i32, i32) {
    %c0_i32 = arith.constant 0 : i32
    %c0_i32_0 = arith.constant 0 : i32
    %c0_i32_1 = arith.constant 0 : i32
    return %c0_i32, %c0_i32_0 : i32, i32
  }
  func.func @transform_1(%arg0: i32) -> (i32, i32) {
    %c0_i32 = arith.constant 0 : i32
    %c0_i32_0 = arith.constant 0 : i32
    return %arg0, %c0_i32 : i32, i32
  }
  func.func @transform_2(%arg0: i32) -> (i32, i32) {
    %c0_i32 = arith.constant 0 : i32
    %c0_i32_0 = arith.constant 0 : i32
    return %arg0, %c0_i32 : i32, i32
  }
  func.func @transform_3(%arg0: i32) -> (i32, i32, i32, i32) {
    %c0_i32 = arith.constant 0 : i32
    %c0_i32_0 = arith.constant 0 : i32
    %c0_i32_1 = arith.constant 0 : i32
    %c0_i32_2 = arith.constant 0 : i32
    return %c0_i32, %arg0, %c0_i32_0, %c0_i32_1 : i32, i32, i32, i32
  }
  func.func @transform_4(%arg0: i32) -> (i32, i32) {
    %c0_i32 = arith.constant 0 : i32
    %c0_i32_0 = arith.constant 0 : i32
    %c0_i32_1 = arith.constant 0 : i32
    return %c0_i32, %c0_i32_0 : i32, i32
  }
  func.func @transform_5(%arg0: i32) -> (i32, i32) {
    %c0_i32 = arith.constant 0 : i32
    %c0_i32_0 = arith.constant 0 : i32
    %c0_i32_1 = arith.constant 0 : i32
    return %c0_i32, %c0_i32_0 : i32, i32
  }
  func.func @transform_6(%arg0: i32) -> (i32, i32) {
    %c0_i32 = arith.constant 0 : i32
    %c0_i32_0 = arith.constant 0 : i32
    %c0_i32_1 = arith.constant 0 : i32
    return %c0_i32, %c0_i32_0 : i32, i32
  }
  func.func @transform_7(%arg0: i32) -> (i32, i32) {
    %c0_i32 = arith.constant 0 : i32
    %c0_i32_0 = arith.constant 0 : i32
    %c0_i32_1 = arith.constant 0 : i32
    return %c0_i32, %c0_i32_0 : i32, i32
  }
  func.func @transform_8(%arg0: i32) -> (i32, i32) {
    %c0_i32 = arith.constant 0 : i32
    %c0_i32_0 = arith.constant 0 : i32
    %c0_i32_1 = arith.constant 0 : i32
    return %c0_i32, %c0_i32_0 : i32, i32
  }
  func.func @transform_9(%arg0: i32) -> (i32, i32) {
    %c0_i32 = arith.constant 0 : i32
    %c0_i32_0 = arith.constant 0 : i32
    %c0_i32_1 = arith.constant 0 : i32
    return %c0_i32, %c0_i32_0 : i32, i32
  }
  func.func @transform_10(%arg0: i32) -> (i32, i32) {
    %c0_i32 = arith.constant 0 : i32
    %c0_i32_0 = arith.constant 0 : i32
    return %arg0, %c0_i32 : i32, i32
  }
}

</mosaic_0001>

<bundles_post_ra>
// kernel: tpu_custom_call.1
= control target key start
LH: loop header
LB: loop body
LE: loop exit
PB: predicated region body
PF: predicated region fallthrough
CT: control target
= control target key end

     0   :  { %15 = vsyncpa [#allocation3], 0  ;;  %s1876_s0 = inlined_call_operand.hbm [shape: f32[8,16], index: 0, kind: input, shape index: {}]   ;;  %s1877_s1 = inlined_call_operand.hbm [shape: f32[8,16], index: 1, kind: input, shape index: {}]   ;;  %s1878_s2 = inlined_call_operand.hbm [shape: f32[8,8], index: 2, kind: input, shape index: {}]   ;;  %s1879_s3 = inlined_call_operand.hbm [shape: bf16[2,8,8,32], index: 3, kind: input, shape index: {}]   ;;  %s1880_s4 = inlined_call_operand.hbm [shape: bf16[16,128], index: 4, kind: input, shape index: {}]   ;;  %s1881_s5 = inlined_call_operand.vmem [shape: f32[1,128], index: 5, kind: input, shape index: {}]   ;;  %s1882_s6 = inlined_call_operand.vmem [shape: bf16[16,96], index: 6, kind: input, shape index: {}]   ;;  %s1883_s7 = inlined_call_operand.vmem [shape: f32[1,96], index: 7, kind: input, shape index: {}]   ;;  %s1884_s8 = inlined_call_operand.vmem [shape: f32[1,32], index: 8, kind: input, shape index: {}]   ;;  %s1885_s9 = inlined_call_operand.vmem [shape: f32[1,32], index: 9, kind: input, shape index: {}]   ;;  %s1886_s10 = inlined_call_operand.hbm [shape: f32[8,32], index: 10, kind: output, shape index: {}]  }
   0x1   :  { %16 = vsyncpa [#allocation6], 0 }
   0x2   :  { %17 = vsyncpa [#allocation9], 0 }
   0x3   :  { %18 = vsyncpa [#allocation4], 0  ;;  %s1526_s13 = smov [#allocation5]   ;;  %s1527_s15 = smov [#allocation8]  }
   0x4   :  { %s35_s14 = sshll.u32 %s1526_s13, 4  ;;  %s54_s16 = sshll.u32 %s1527_s15, 4  ;;  %s36_s14 = int_to_ptr.vmem [resolvable:$true] %s35_s14  ;;  %s55_s16 = int_to_ptr.vmem [resolvable:$true] %s54_s16 }
   0x5   :  { %s1406_s17 = scalar_lea.vmem %s36_s14, 128  ;;  %p1411_p1 = scmp.lt.s32.totalorder %s36_s14, %s36_s14 }
   0x6   :  { %p1407_p0 = scmp.ne.s32.totalorder %s36_s14, %s1406_s17  ;;  %p1412_p2 = scmp.lt.s32.totalorder %s1406_s17, %s1406_s17 }
   0x8   :  { %p1413_p3 = por %p1412_p2, %p1411_p1 }
   0xa   :  { %p1414_p4 = pnand %p1413_p3, %p1407_p0 }
   0xc   :  { %1417 = shalt.err (!%p1414_p4)
}
   0xd   :  { %38 = dma.hbm_to_vmem [thread:$0]  %s1877_s1, 128, %s36_s14, [#allocation6]  }
   0xe   :  { %s1426_s20 = scalar_lea.vmem %s55_s16, 1024  ;;  %p1431_p6 = scmp.lt.s32.totalorder %s55_s16, %s55_s16 }
   0xf   :  { %p1427_p5 = scmp.ne.s32.totalorder %s55_s16, %s1426_s20  ;;  %p1432_p7 = scmp.lt.s32.totalorder %s1426_s20, %s1426_s20 }
  0x11   :  { %p1433_p8 = por %p1432_p7, %p1431_p6 }
  0x13   :  { %p1434_p9 = pnand %p1433_p8, %p1427_p5 }
  0x15   :  { %1437 = shalt.err (!%p1434_p9)
}
  0x16   :  { %s1528_s21 = smov 64   ;;  %s1529_s22 = smov 4  }
  0x17   :  { %60 = dma.hbm_to_vmem [thread:$0]  %s1879_s3, 1024, %s55_s16, [#allocation9], %s1528_s21, %s1528_s21, %s1529_s22  }
  0x18   :  { %s1530_s25 = smov [#allocation2]   ;;  %s1531_s27 = smov [#allocation7]  }
  0x19   :  { %s25_s26 = sshll.u32 %s1530_s25, 4  ;;  %s45_s1 = sshll.u32 %s1531_s27, 4  ;;  %s26_s26 = int_to_ptr.vmem [resolvable:$true] %s25_s26  ;;  %s46_s1 = int_to_ptr.vmem [resolvable:$true] %s45_s1 }
  0x1a   :  { %s1446_s28 = scalar_lea.vmem %s26_s26, 128  ;;  %p1451_p11 = scmp.lt.s32.totalorder %s26_s26, %s26_s26 }
  0x1b   :  { %p1447_p10 = scmp.ne.s32.totalorder %s26_s26, %s1446_s28  ;;  %p1452_p12 = scmp.lt.s32.totalorder %s1446_s28, %s1446_s28 }
  0x1d   :  { %p1453_p13 = por %p1452_p12, %p1451_p11 }
  0x1f   :  { %p1454_p0 = pnand %p1453_p13, %p1447_p10 }
  0x21   :  { %1457 = shalt.err (!%p1454_p0)
}
  0x22   :  { %28 = dma.hbm_to_vmem [thread:$0]  %s1876_s0, 128, %s26_s26, [#allocation3]  }
  0x23   :  { %s1466_s11 = scalar_lea.vmem %s46_s1, 128  ;;  %p1471_p2 = scmp.lt.s32.totalorder %s46_s1, %s46_s1 }
  0x24   :  { %p1467_p1 = scmp.ne.s32.totalorder %s46_s1, %s1466_s11  ;;  %p1472_p3 = scmp.lt.s32.totalorder %s1466_s11, %s1466_s11 }
  0x26   :  { %p1473_p4 = por %p1472_p3, %p1471_p2 }
  0x28   :  { %p1474_p5 = pnand %p1473_p4, %p1467_p1 }
  0x2a   :  { %1477 = shalt.err (!%p1474_p5)
}
  0x2b   :  { %48 = dma.hbm_to_vmem [thread:$0]  %s1878_s2, 128, %s46_s1, [#allocation6]  }
  0x2c   :  { %s1532_s13 = smov [#allocation10]  }
  0x2d   :  { %s66_s14 = sshll.u32 %s1532_s13, 4  ;;  %s67_s14 = int_to_ptr.vmem [resolvable:$true] %s66_s14 }
  0x2e   :  { %s1486_s15 = scalar_lea.vmem %s67_s14, 128  ;;  %p1491_p7 = scmp.lt.s32.totalorder %s67_s14, %s67_s14 }
  0x2f   :  { %p1487_p6 = scmp.ne.s32.totalorder %s67_s14, %s1486_s15  ;;  %p1492_p8 = scmp.lt.s32.totalorder %s1486_s15, %s1486_s15 }
  0x31   :  { %p1493_p9 = por %p1492_p8, %p1491_p7 }
  0x33   :  { %p1494_p10 = pnand %p1493_p9, %p1487_p6 }
  0x35   :  { %1497 = shalt.err (!%p1494_p10)
}
  0x36   :  { %72 = dma.hbm_to_vmem [thread:$0]  %s1880_s4, 128, %s67_s14, [#allocation9], %s1528_s21, %s1528_s21, %s1529_s22  }
  0x37   :  { %1518 = dma.done.wait [#allocation3], 128  }
  0x38   :  { %1519 = vsyncadd [#allocation3], 4294967168 }
  0x39   :  { %1520 = dma.done.wait [#allocation6], 256  }
  0x3a   :  { %1521 = vsyncadd [#allocation6], 4294967040 }
  0x3b   :  { %1522 = dma.done.wait [#allocation9], 1152  }
  0x3c   :  { %1523 = vsyncadd [#allocation9], 4294966144  ;;  %v1533_v0 = vmov 0.0   ;;  %vm1534_vm0 = vmmov 0   ;;  %v1382_v1 = vld [vmem:[#allocation10] sm:$0xff]   ;;  %v1383_v2 = vld [vmem:[%s1882_s6] sm:$0xff]   ;;  %v256_v9 = vlaneseq }
  0x3d   :  { %1333 = vmatprep.subr.bf16.mxu0 %v1533_v0  ;;  %1339 = vmatprep.subr.bf16.mxu1 %v1533_v0  ;;  %v99_v3 = vld [vmem:[#allocation2] sm:$0xff]  ;;  %vm137_vm1 = vcmask 130048   ;;  %v101_v4 = vld [vmem:[#allocation5] sm:$0xff]  ;;  %v1535_v7 = vmov 1966171168   ;;  %vm541_vm2 = vcmask 261120  }
  0x3e   :  { %1335 = vmatprep.mubr.msk.bf16.mxu0 %vm1534_vm0, %v1533_v0  ;;  %1341 = vmatprep.mubr.msk.bf16.mxu1 %vm1534_vm0, %v1533_v0  ;;  %v100_v5 = vpack.c.bf16 %v99_v3, %v99_v3  ;;  %v102_v6 = vpack.c.bf16 %v101_v4, %v101_v4  ;;  %v254_v8 = vunpack.c.l.s4 %v1535_v7  ;;  %v1300_v10 = vld [vmem:[%s1881_s5] ss:$0 sm:$0xff]  ;;  %v1634_v12 = vshrl.u32 %v256_v9, 7  ;;  %s1536_s5 = smov 96   ;;  %v1665_v46 = vld [vmem:[#allocation8] sm:$0xf] }
  0x3f   :  { %1334 = vmatpush3.bf16.msra.mxu0 %v1382_v1  ;;  %1340 = vmatpush3.bf16.msra.mxu1 %v1383_v2  ;;  %v1303_v13 = vld [vmem:[%s1883_s7] ss:$0 sm:$0xff]  ;;  %v1668_v51 = vld [vmem:[#allocation8 + $0x4] sm:$0xf]  ;;  %vm632_vm3 = vcmask 1041409   ;;  %vm634_vm4 = vcmask 1042434  }
  0x40   :  { %1345 = vmatprep.subr.bf16.mxu0 %v1533_v0  ;;  %1351 = vmatprep.subr.bf16.mxu1 %v1533_v0  ;;  %v255_v11 = vunpack.c.0.s8 %v254_v8  ;;  %v1655_v31 = vsub.s32 0, %v1634_v12  ;;  %v1670_v52 = vld [vmem:[#allocation8 + $0x8] sm:$0xf]  ;;  %vm636_vm5 = vcmask 1043459   ;;  %vm638_vm6 = vcmask 1044484  }
  0x41   :  { %vm640_vm7 = vcmask 1045509   ;;  %vm642_vm8 = vcmask 1046534   ;;  %vm644_vm9 = vcmask 1047559   ;;  %vm791_vm10 = vcmask 64512  }
  0x42   :  { %1336 = vmatmul.mubr.msk.bf16.vlgmr.msra.gmra.mxu0 %vm137_vm1, %v100_v5  ;;  %1342 = vmatmul.mubr.msk.bf16.vlgmr.msra.gmra.mxu1 %vm137_vm1, %v102_v6  ;;  %v1642_v18 = vsub.s32 %v255_v11, %v1634_v12  ;;  %v1681_v6 = vld [vmem:[#allocation8 + $0x10] sm:$0xf]  ;;  %vm1111_vm12 = vcmask 1043456  }
  0x43   :  { %1347 = vmatprep.mubr.msk.bf16.mxu0 %vm1534_vm0, %v1533_v0  ;;  %1353 = vmatprep.mubr.msk.bf16.mxu1 %vm1534_vm0, %v1533_v0 }
 0x102   :  { %v175_v14 = vpop.f32.mrf.mxu0  ;;  %v233_v16 = vpop.f32.mrf.mxu1 }
 0x103   :  { %v176_v15 = vadd.f32 %v1300_v10, %v175_v14  ;;  %v1639_v17 = vadd.f32 %v1303_v13, %v233_v16 }
 0x104   :  { %v1337_v19 = vpop.f32.mrf.mxu0  ;;  %v1343_v21 = vpop.f32.mrf.mxu1 }
 0x105   :  { %v1644_v20 = vpack.c.bf16 %v176_v15, %v176_v15  ;;  %240 = vrot.lane.b32.xlu0 %v176_v15, %s1536_s5  ;;  %v247_v22 = vpack.c.bf16 %v1639_v17, %v1639_v17  ;;  %v1687_v15 = vld [vmem:[#allocation8 + $0xc] sm:$0xf] }
 0x106   :  { %v178_v23 = vpop.f32.mrf.mxu0  ;;  %v236_v25 = vpop.f32.mrf.mxu1 }
 0x107   :  { %v651_v24 = vsel %vm541_vm2, %v1644_v20, 0  ;;  %v259_v26 = vrot.slane %v247_v22, %v1642_v18 }
 0x108   :  { %v1338_v27 = vpop.f32.mrf.mxu0  ;;  %1346 = vmatpush3.bf16.xpose.msra.mxu0 %v651_v24  ;;  %v1344_v28 = vpop.f32.mrf.mxu1  ;;  %v1692_v24 = vld [vmem:[#allocation8 + $0x14] sm:$0xf] }
 0x109   :  { %244 = vrot.lane.b32.xlu0 %v1639_v17, %s1536_s5  ;;  %1357 = vmatprep.subr.bf16.mxu0 %v1533_v0  ;;  %v260_v29 = vcombine.high %v259_v26, %v259_v26  ;;  %v267_v30 = vrot.slane %v259_v26, %v1642_v18 }
 0x10b   :  { %v274_v32 = vrot.slane %v260_v29, %v1642_v18  ;;  %v1306_v33 = vpack.i.b16 %v267_v30, %v267_v30  ;;  %v302_v34 = vunpack.i.h.s16 %v267_v30  ;;  %v275_v35 = vcombine.high %v267_v30, %v267_v30  ;;  %v1697_v29 = vld [vmem:[#allocation8 + $0x18] sm:$0xf] }
 0x10d   :  { %v336_v36 = vrot.slane %v1306_v33, %v1655_v31  ;;  %v318_v37 = vpack.i.b16 %v302_v34, %v302_v34  ;;  %v1307_v38 = vpack.i.b16 %v274_v32, %v274_v32  ;;  %v1308_v39 = vpack.i.b16 %v275_v35, %v275_v35 }
 0x10e   :  { %v304_v40 = vunpack.i.h.s16 %v274_v32  ;;  %v306_v41 = vunpack.i.h.s16 %v275_v35  ;;  %v276_v55 = vcombine.high %v274_v32, %v274_v32 }
 0x10f   :  { %1348 = vmatmul.mubr.msk.bf16.vlgmr.msra.gmra.mxu0 %vm541_vm2, %v247_v22  ;;  %v398_v42 = vpack.i.b16 %v336_v36, %v336_v36  ;;  %v340_v43 = vrot.slane %v318_v37, %v1655_v31  ;;  %v344_v44 = vrot.slane %v1307_v38, %v1655_v31  ;;  %v352_v45 = vrot.slane %v1308_v39, %v1655_v31 }
 0x110   :  { %1359 = vmatprep.mubr.msk.bf16.mxu0 %vm1534_vm0, %v1533_v0  ;;  %v320_v47 = vpack.i.b16 %v304_v40, %v304_v40  ;;  %v322_v54 = vpack.i.b16 %v306_v41, %v306_v41  ;;  %v1309_v1 = vpack.i.b16 %v276_v55, %v276_v55 }
 0x111   :  { %v403_v48 = vrot.slane %v398_v42, %v1655_v31  ;;  %v405_v49 = vpack.i.b16 %v340_v43, %v340_v43  ;;  %v412_v50 = vpack.i.b16 %v344_v44, %v344_v44  ;;  %v426_v53 = vpack.i.b16 %v352_v45, %v352_v45 }
 0x112   :  { %v348_v59 = vrot.slane %v320_v47, %v1655_v31  ;;  %v356_v63 = vrot.slane %v322_v54, %v1655_v31  ;;  %v360_v14 = vrot.slane %v1309_v1, %v1655_v31  ;;  %v308_v42 = vunpack.i.h.s16 %v276_v55 }
 0x113   :  { %v509_v56 = vmul.bf16 %v403_v48, %v1665_v46  ;;  %v410_v57 = vrot.slane %v405_v49, %v1655_v31  ;;  %v417_v58 = vrot.slane %v412_v50, %v1655_v31  ;;  %v431_v4 = vrot.slane %v426_v53, %v1655_v31 }
 0x114   :  { %v419_v5 = vpack.i.b16 %v348_v59, %v348_v59  ;;  %v433_v13 = vpack.i.b16 %v356_v63, %v356_v63  ;;  %v440_v23 = vpack.i.b16 %v360_v14, %v360_v14  ;;  %v324_v47 = vpack.i.b16 %v308_v42, %v308_v42 }
 0x115   :  { %v525_v60 = vunpack.c.l.bf16 %v509_v56  ;;  %v510_v61 = vmul.bf16 %v410_v57, %v1668_v51  ;;  %v511_v62 = vmul.bf16 %v417_v58, %v1670_v52  ;;  %v513_v10 = vmul.bf16 %v431_v4, %v1681_v6 }
 0x116   :  { %v424_v11 = vrot.slane %v419_v5, %v1655_v31  ;;  %v438_v22 = vrot.slane %v433_v13, %v1655_v31  ;;  %v445_v28 = vrot.slane %v440_v23, %v1655_v31  ;;  %v1724_v13 = vld [vmem:[#allocation8 + $0x24] sm:$0xf] }
 0x117   :  { %v542_v2 = vsel %vm541_vm2, %v525_v60, 0.0  ;;  %v526_v3 = vunpack.c.l.bf16 %v510_v61  ;;  %v527_v8 = vunpack.c.l.bf16 %v511_v62  ;;  %v529_v19 = vunpack.c.l.bf16 %v513_v10 }
 0x118   :  { %543 = vadd.xlane.f32.xlu1 %v542_v2  ;;  %v512_v21 = vmul.bf16 %v424_v11, %v1687_v15  ;;  %v514_v27 = vmul.bf16 %v438_v22, %v1692_v24  ;;  %v515_v33 = vmul.bf16 %v445_v28, %v1697_v29  ;;  %v364_v61 = vrot.slane %v324_v47, %v1655_v31  ;;  %v1717_v2 = vld [vmem:[#allocation8 + $0x20] sm:$0xf]  ;;  %v1731_v28 = vld [vmem:[#allocation8 + $0x34] sm:$0xf] }
 0x119   :  { %v545_v7 = vsel %vm541_vm2, %v526_v3, 0.0  ;;  %v548_v16 = vsel %vm541_vm2, %v527_v8, 0.0  ;;  %v554_v25 = vsel %vm541_vm2, %v529_v19, 0.0 }
 0x11a   :  { %v528_v26 = vunpack.c.l.bf16 %v512_v21  ;;  %v530_v32 = vunpack.c.l.bf16 %v514_v27  ;;  %v531_v35 = vunpack.c.l.bf16 %v515_v33 }
 0x11c   :  { %546 = vadd.xlane.f32.xlu1 %v545_v7  ;;  %v551_v30 = vsel %vm541_vm2, %v528_v26, 0.0  ;;  %v557_v34 = vsel %vm541_vm2, %v530_v32, 0.0  ;;  %v560_v36 = vsel %vm541_vm2, %v531_v35, 0.0  ;;  %v1729_v26 = vld [vmem:[#allocation8 + $0x28] sm:$0xf] }
 0x11d   :  { %v1734_v32 = vld [vmem:[#allocation8 + $0x38] sm:$0xf] }
 0x120   :  { %549 = vadd.xlane.f32.xlu1 %v548_v16 }
 0x124   :  { %555 = vadd.xlane.f32.xlu1 %v554_v25 }
 0x128   :  { %552 = vadd.xlane.f32.xlu1 %v551_v30 }
 0x12c   :  { %558 = vadd.xlane.f32.xlu1 %v557_v34 }
 0x130   :  { %561 = vadd.xlane.f32.xlu1 %v560_v36 }
 0x177   :  { %v241_v37 = vpop.permute.xlu0 %240 }
 0x178   :  { %v1703_v38 = vpack.c.bf16 %v241_v37, %v241_v37 }
 0x17a   :  { %v745_v39 = vsel %vm541_vm2, %v1703_v38, 0 }
 0x17b   :  { %1352 = vmatpush3.bf16.xpose.msra.mxu1 %v745_v39  ;;  %v245_v40 = vpop.permute.xlu0 %244 }
 0x17c   :  { %v248_v41 = vpack.c.bf16 %v245_v40, %v245_v40  ;;  %1363 = vmatprep.subr.bf16.mxu1 %v1533_v0 }
 0x17e   :  { %v283_v43 = vrot.slane %v248_v41, %v1642_v18 }
 0x180   :  { %v284_v44 = vcombine.high %v283_v43, %v283_v43  ;;  %v291_v45 = vrot.slane %v283_v43, %v1642_v18 }
 0x182   :  { %v298_v48 = vrot.slane %v284_v44, %v1642_v18  ;;  %v299_v49 = vcombine.high %v291_v45, %v291_v45  ;;  %v310_v50 = vunpack.i.h.s16 %v291_v45  ;;  %v1310_v53 = vpack.i.b16 %v291_v45, %v291_v45  ;;  %1354 = vmatmul.mubr.msk.bf16.vlgmr.msra.gmra.mxu1 %vm541_vm2, %v248_v41  ;;  %v1741_v41 = vld [vmem:[#allocation8 + $0x30] sm:$0xf] }
 0x183   :  { %1365 = vmatprep.mubr.msk.bf16.mxu1 %vm1534_vm0, %v1533_v0 }
 0x184   :  { %v300_v54 = vcombine.high %v298_v48, %v298_v48  ;;  %v368_v56 = vrot.slane %v1310_v53, %v1655_v31  ;;  %v326_v55 = vpack.i.b16 %v310_v50, %v310_v50  ;;  %v314_v57 = vunpack.i.h.s16 %v299_v49  ;;  %v1748_v53 = vld [vmem:[#allocation8 + $0x3c] sm:$0xf] }
 0x185   :  { %v1311_v58 = vpack.i.b16 %v298_v48, %v298_v48  ;;  %v1312_v59 = vpack.i.b16 %v299_v49, %v299_v49  ;;  %v312_v60 = vunpack.i.h.s16 %v298_v48 }
 0x186   :  { %v454_v62 = vpack.i.b16 %v368_v56, %v368_v56  ;;  %v372_v18 = vrot.slane %v326_v55, %v1655_v31  ;;  %v330_v63 = vpack.i.b16 %v314_v57, %v314_v57  ;;  %v1313_v1 = vpack.i.b16 %v300_v54, %v300_v54 }
 0x187   :  { %v376_v3 = vrot.slane %v1311_v58, %v1655_v31  ;;  %v384_v0 = vrot.slane %v1312_v59, %v1655_v31  ;;  %v316_v4 = vunpack.i.h.s16 %v300_v54  ;;  %v328_v5 = vpack.i.b16 %v312_v60, %v312_v60  ;;  %v1753_v60 = vld [vmem:[#allocation8 + $0x2c] sm:$0xf] }
 0x188   :  { %v459_v7 = vrot.slane %v454_v62, %v1655_v31  ;;  %v461_v8 = vpack.i.b16 %v372_v18, %v372_v18  ;;  %v388_v10 = vrot.slane %v330_v63, %v1655_v31  ;;  %v392_v11 = vrot.slane %v1313_v1, %v1655_v31 }
 0x189   :  { %v468_v14 = vpack.i.b16 %v376_v3, %v376_v3  ;;  %v482_v16 = vpack.i.b16 %v384_v0, %v384_v0  ;;  %v332_v19 = vpack.i.b16 %v316_v4, %v316_v4  ;;  %v380_v21 = vrot.slane %v328_v5, %v1655_v31  ;;  %v1761_v4 = vld [vmem:[#allocation8 + $0x1c] sm:$0xf] }
 0x18a   :  { %v517_v22 = vmul.bf16 %v459_v7, %v1717_v2  ;;  %v466_v23 = vrot.slane %v461_v8, %v1655_v31  ;;  %v489_v25 = vpack.i.b16 %v388_v10, %v388_v10  ;;  %v496_v27 = vpack.i.b16 %v392_v11, %v392_v11 }
 0x18b   :  { %v473_v30 = vrot.slane %v468_v14, %v1655_v31  ;;  %v487_v33 = vrot.slane %v482_v16, %v1655_v31  ;;  %v396_v34 = vrot.slane %v332_v19, %v1655_v31  ;;  %v475_v35 = vpack.i.b16 %v380_v21, %v380_v21 }
 0x18c   :  { %v533_v36 = vunpack.c.l.bf16 %v517_v22  ;;  %v518_v37 = vmul.bf16 %v466_v23, %v1724_v13  ;;  %v494_v39 = vrot.slane %v489_v25, %v1655_v31  ;;  %v501_v40 = vrot.slane %v496_v27, %v1655_v31 }
 0x18d   :  { %v519_v42 = vmul.bf16 %v473_v30, %v1729_v26  ;;  %v503_v43 = vpack.i.b16 %v396_v34, %v396_v34  ;;  %v521_v50 = vmul.bf16 %v487_v33, %v1741_v41  ;;  %v447_v56 = vpack.i.b16 %v364_v61, %v364_v61 }
 0x18e   :  { %v566_v44 = vsel %vm541_vm2, %v533_v36, 0.0  ;;  %v534_v45 = vunpack.c.l.bf16 %v518_v37  ;;  %v522_v47 = vmul.bf16 %v494_v39, %v1731_v28  ;;  %v523_v48 = vmul.bf16 %v501_v40, %v1734_v32 }
 0x18f   :  { %567 = vadd.xlane.f32.xlu0 %v566_v44  ;;  %v535_v49 = vunpack.c.l.bf16 %v519_v42  ;;  %v508_v54 = vrot.slane %v503_v43, %v1655_v31  ;;  %v480_v59 = vrot.slane %v475_v35, %v1655_v31  ;;  %v537_v3 = vunpack.c.l.bf16 %v521_v50 }
 0x190   :  { %v569_v55 = vsel %vm541_vm2, %v534_v45, 0.0  ;;  %v538_v57 = vunpack.c.l.bf16 %v522_v47  ;;  %v539_v58 = vunpack.c.l.bf16 %v523_v48  ;;  %v452_v0 = vrot.slane %v447_v56, %v1655_v31 }
 0x191   :  { %570 = vadd.xlane.f32.xlu1 %v569_v55  ;;  %v572_v18 = vsel %vm541_vm2, %v535_v49, 0.0  ;;  %v524_v63 = vmul.bf16 %v508_v54, %v1748_v53  ;;  %v520_v61 = vmul.bf16 %v480_v59, %v1753_v60  ;;  %v578_v7 = vsel %vm541_vm2, %v537_v3, 0.0  ;;  %v1771_v54 = vld [vmem:[#allocation7] sm:$0xff] }
 0x192   :  { %v581_v62 = vsel %vm541_vm2, %v538_v57, 0.0  ;;  %v584_v1 = vsel %vm541_vm2, %v539_v58, 0.0  ;;  %v516_v10 = vmul.bf16 %v452_v0, %v1761_v4  ;;  %v599_v39 = vand.u32 127, %v256_v9 }
 0x193   :  { %582 = vadd.xlane.f32.xlu0 %v581_v62  ;;  %v540_v5 = vunpack.c.l.bf16 %v524_v63  ;;  %v536_v8 = vunpack.c.l.bf16 %v520_v61  ;;  %v1316_v62 = vadd.f32 -1.0, %v1771_v54 }
 0x194   :  { %v532_v16 = vunpack.c.l.bf16 %v516_v10  ;;  %v602_v42 = vsub.s32 %v599_v39, %v1634_v12 }
 0x195   :  { %573 = vadd.xlane.f32.xlu1 %v572_v18  ;;  %v587_v11 = vsel %vm541_vm2, %v540_v5, 0.0  ;;  %v575_v14 = vsel %vm541_vm2, %v536_v8, 0.0  ;;  %v788_v5 = vmul.f32 1e+30, %v1316_v62 }
 0x196   :  { %v563_v19 = vsel %vm541_vm2, %v532_v16, 0.0 }
 0x197   :  { %585 = vadd.xlane.f32.xlu0 %v584_v1 }
 0x199   :  { %579 = vadd.xlane.f32.xlu1 %v578_v7 }
 0x19b   :  { %588 = vadd.xlane.f32.xlu0 %v587_v11 }
 0x19d   :  { %576 = vadd.xlane.f32.xlu1 %v575_v14 }
 0x1a1   :  { %564 = vadd.xlane.f32.xlu1 %v563_v19  ;;  %v544_v27 = vpop.xlane.xlu1 %543 }
 0x1a2   :  { %v603_v44 = vrot.slane %v544_v27, %v602_v42 }
 0x1a5   :  { %v547_v30 = vpop.xlane.xlu1 %546 }
 0x1a6   :  { %v607_v45 = vrot.slane %v547_v30, %v602_v42 }
 0x1a8   :  { %v633_v49 = vsel %vm632_vm3, %v607_v45, %v603_v44 }
 0x1a9   :  { %v550_v33 = vpop.xlane.xlu1 %549 }
 0x1aa   :  { %v611_v47 = vrot.slane %v550_v33, %v602_v42 }
 0x1ac   :  { %v635_v56 = vsel %vm634_vm4, %v611_v47, %v633_v49 }
 0x1ad   :  { %v556_v34 = vpop.xlane.xlu1 %555 }
 0x1ae   :  { %v619_v58 = vrot.slane %v556_v34, %v602_v42 }
 0x1b1   :  { %v553_v35 = vpop.xlane.xlu1 %552 }
 0x1b2   :  { %v615_v50 = vrot.slane %v553_v35, %v602_v42 }
 0x1b4   :  { %v637_v9 = vsel %vm636_vm5, %v615_v50, %v635_v56 }
 0x1b5   :  { %v559_v36 = vpop.xlane.xlu1 %558  ;;  %v639_v18 = vsel %vm638_vm6, %v619_v58, %v637_v9 }
 0x1b6   :  { %v623_v57 = vrot.slane %v559_v36, %v602_v42 }
 0x1b8   :  { %v641_v1 = vsel %vm640_vm7, %v623_v57, %v639_v18 }
 0x1b9   :  { %v562_v37 = vpop.xlane.xlu1 %561 }
 0x1ba   :  { %v627_v59 = vrot.slane %v562_v37, %v602_v42 }
 0x1bc   :  { %v643_v0 = vsel %vm642_vm8, %v627_v59, %v641_v1 }
 0x1cf   :  { %v687_v21 = vpop.f32.mrf.mxu0 }
 0x1d1   :  { %v1349_v22 = vpop.f32.mrf.mxu0 }
 0x1d3   :  { %v690_v23 = vpop.f32.mrf.mxu0 }
 0x1d5   :  { %v1350_v25 = vpop.f32.mrf.mxu0 }
 0x218   :  { %v568_v3 = vpop.xlane.xlu0 %567 }
 0x219   :  { %v704_v8 = vrot.slane %v568_v3, %v602_v42 }
 0x21a   :  { %v571_v40 = vpop.xlane.xlu1 %570 }
 0x21b   :  { %v708_v10 = vrot.slane %v571_v40, %v602_v42 }
 0x21c   :  { %v583_v16 = vpop.xlane.xlu0 %582 }
 0x21d   :  { %v733_v22 = vsel %vm632_vm3, %v708_v10, %v704_v8  ;;  %v724_v36 = vrot.slane %v583_v16, %v602_v42 }
 0x21e   :  { %v574_v43 = vpop.xlane.xlu1 %573 }
 0x21f   :  { %v712_v19 = vrot.slane %v574_v43, %v602_v42 }
 0x220   :  { %v586_v33 = vpop.xlane.xlu0 %585 }
 0x221   :  { %v734_v27 = vsel %vm634_vm4, %v712_v19, %v733_v22  ;;  %v728_v37 = vrot.slane %v586_v33, %v602_v42 }
 0x222   :  { %v580_v48 = vpop.xlane.xlu1 %579 }
 0x223   :  { %v720_v34 = vrot.slane %v580_v48, %v602_v42 }
 0x224   :  { %v589_v39 = vpop.xlane.xlu0 %588 }
 0x225   :  { %v732_v43 = vrot.slane %v589_v39, %v602_v42 }
 0x226   :  { %v577_v55 = vpop.xlane.xlu1 %576 }
 0x227   :  { %v716_v23 = vrot.slane %v577_v55, %v602_v42 }
 0x229   :  { %v735_v30 = vsel %vm636_vm5, %v716_v23, %v734_v27  ;;  %v858_v27 = vsub.s32 2, %v1634_v12 }
 0x22a   :  { %v565_v63 = vpop.xlane.xlu1 %564  ;;  %v736_v35 = vsel %vm638_vm6, %v720_v34, %v735_v30 }
 0x22b   :  { %v631_v61 = vrot.slane %v565_v63, %v602_v42 }
 0x22d   :  { %v645_v7 = vsel %vm644_vm9, %v631_v61, %v643_v0 }
 0x22e   :  { %v688_v11 = vadd.f32 %v687_v21, %v645_v7  ;;  %v737_v21 = vsel %vm640_vm7, %v724_v36, %v736_v35 }
 0x22f   :  { %v738_v40 = vsel %vm642_vm8, %v728_v37, %v737_v21 }
 0x230   :  { %v789_v14 = vadd.f32 %v788_v5, %v688_v11  ;;  %v739_v44 = vsel %vm644_vm9, %v732_v43, %v738_v40 }
 0x232   :  { %v792_v25 = vsel %vm791_vm10, %v789_v14, -inf }
 0x233   :  { %793 = vmax.xlane.f32.xlu1 %v792_v25 }
 0x242   :  { %v781_v45 = vpop.f32.mrf.mxu1 }
 0x243   :  { %v782_v47 = vadd.f32 %v781_v45, %v739_v44 }
 0x244   :  { %v1355_v49 = vpop.f32.mrf.mxu1 }
 0x245   :  { %v790_v50 = vadd.f32 %v788_v5, %v782_v47  ;;  %v872_v49 = vsub.s32 3, %v1634_v12 }
 0x246   :  { %v784_v56 = vpop.f32.mrf.mxu1 }
 0x247   :  { %v795_v55 = vsel %vm791_vm10, %v790_v50, -inf }
 0x248   :  { %v1356_v48 = vpop.f32.mrf.mxu1  ;;  %796 = vmax.xlane.f32.xlu0 %v795_v55 }
 0x2bc   :  { %v794_v9 = vpop.xlane.xlu1 %793 }
 0x2bd   :  { %v798_v57 = vsub.f32 %v789_v14, %v794_v9 }
 0x2bf   :  { %v800_v58 = vmul.f32 1.442695, %v798_v57 }
 0x2c1   :  { %1384 = vpow2.f32 %v800_v58 }
 0x2ce   :  { %v1385_v59 = vpop.eup %1384 }
 0x2cf   :  { %v804_v62 = vmul.f32 %v1385_v59, %v1771_v54 }
 0x2d1   :  { %v797_v18 = vpop.xlane.xlu0 %796  ;;  %v806_v42 = vsel %vm791_vm10, %v804_v62, 0.0 }
 0x2d2   :  { %v799_v63 = vsub.f32 %v790_v50, %v797_v18  ;;  %807 = vadd.xlane.f32.xlu1 %v806_v42 }
 0x2d4   :  { %v802_v1 = vmul.f32 1.442695, %v799_v63 }
 0x2d6   :  { %1386 = vpow2.f32 %v802_v1 }
 0x2e3   :  { %v1387_v3 = vpop.eup %1386  ;;  %1091 = vrot.lane.b32.xlu1 %v1644_v20, %s1528_s21 }
 0x2e4   :  { %v805_v61 = vmul.f32 %v1387_v3, %v1771_v54  ;;  %v844_v54 = vsub.s32 1, %v1634_v12 }
 0x2e6   :  { %v809_v0 = vsel %vm791_vm10, %v805_v61, 0.0 }
 0x2e7   :  { %810 = vadd.xlane.f32.xlu0 %v809_v0 }
 0x2fd   :  { %1156 = vrot.lane.b32.xlu0 %v1703_v38, %s1528_s21 }
 0x35b   :  { %v808_v5 = vpop.xlane.xlu1 %807 }
 0x35c   :  { %vm812_vm11 = vcmp.gt.f32.partialorder %v808_v5, 0.0 }
 0x35d   :  { %v814_v7 = vsel %vm812_vm11, %v808_v5, 1.0 }
 0x35e   :  { %1388 = vrcp.f32 %v814_v7 }
 0x35f   :  { %v1092_v8 = vpop.permute.xlu1 %1091 }
 0x360   :  { %v1113_v10 = vsel %vm1111_vm12, %v1092_v8, 0 }
 0x361   :  { %1358 = vmatpush3.bf16.msra.mxu0 %v1113_v10 }
 0x36b   :  { %v1389_v11 = vpop.eup %1388 }
 0x36c   :  { %v818_v14 = vmul.f32 %v1389_v11, %v804_v62 }
 0x36e   :  { %v820_v20 = vpack.c.bf16 %v818_v14, %v818_v14 }
 0x370   :  { %v811_v16 = vpop.xlane.xlu0 %810  ;;  %1360 = vmatmul.mubr.msk.bf16.vlgmr.msra.gmra.mxu0 %vm791_vm10, %v820_v20  ;;  %v823_v19 = vpack.i.b16 %v820_v20, %v820_v20  ;;  %v832_v22 = vshrl.u32 %v820_v20, 16 }
 0x371   :  { %vm813_vm13 = vcmp.gt.f32.partialorder %v811_v16, 0.0 }
 0x372   :  { %v815_v38 = vsel %vm813_vm13, %v811_v16, 1.0  ;;  %v845_v23 = vrot.slane %v823_v19, %v844_v54  ;;  %v828_v25 = vrot.slane %v823_v19, %v1655_v31  ;;  %v833_v30 = vpack.i.b16 %v832_v22, %v832_v22 }
 0x373   :  { %1390 = vrcp.f32 %v815_v38  ;;  %v859_v35 = vrot.slane %v823_v19, %v858_v27  ;;  %v873_v50 = vrot.slane %v823_v19, %v872_v49 }
 0x374   :  { %v1157_v33 = vpop.permute.xlu0 %1156  ;;  %847 = vbcast.lane.c.b16.xlu0 %v845_v23, 256  ;;  %830 = vbcast.lane.c.b16.xlu1 %v828_v25, 256  ;;  %v838_v36 = vrot.slane %v833_v30, %v1655_v31  ;;  %v852_v21 = vrot.slane %v833_v30, %v844_v54  ;;  %v866_v37 = vrot.slane %v833_v30, %v858_v27 }
 0x375   :  { %v1177_v34 = vsel %vm1111_vm12, %v1157_v33, 0  ;;  %v880_v48 = vrot.slane %v833_v30, %v872_v49 }
 0x376   :  { %1364 = vmatpush3.bf16.msra.mxu1 %v1177_v34 }
 0x378   :  { %861 = vbcast.lane.c.b16.xlu0 %v859_v35, 256  ;;  %840 = vbcast.lane.c.b16.xlu1 %v838_v36, 256 }
 0x37c   :  { %854 = vbcast.lane.c.b16.xlu0 %v852_v21, 256 }
 0x380   :  { %v1391_v39 = vpop.eup %1390  ;;  %868 = vbcast.lane.c.b16.xlu0 %v866_v37, 256 }
 0x381   :  { %v819_v40 = vmul.f32 %v1391_v39, %v805_v61 }
 0x383   :  { %v821_v43 = vpack.c.bf16 %v819_v40, %v819_v40 }
 0x385   :  { %1366 = vmatmul.mubr.msk.bf16.vlgmr.msra.gmra.mxu1 %vm791_vm10, %v821_v43  ;;  %v885_v44 = vpack.i.b16 %v821_v43, %v821_v43  ;;  %v894_v55 = vshrl.u32 %v821_v43, 16 }
 0x387   :  { %v890_v45 = vrot.slane %v885_v44, %v1655_v31  ;;  %v907_v47 = vrot.slane %v885_v44, %v844_v54  ;;  %v921_v56 = vrot.slane %v885_v44, %v858_v27  ;;  %v935_v9 = vrot.slane %v885_v44, %v872_v49 }
 0x388   :  { %v895_v57 = vpack.i.b16 %v894_v55, %v894_v55 }
 0x389   :  { %892 = vbcast.lane.c.b16.xlu0 %v890_v45, 256  ;;  %909 = vbcast.lane.c.b16.xlu1 %v907_v47, 256 }
 0x38a   :  { %v900_v58 = vrot.slane %v895_v57, %v1655_v31  ;;  %v914_v59 = vrot.slane %v895_v57, %v844_v54  ;;  %v928_v12 = vrot.slane %v895_v57, %v858_v27  ;;  %v942_v62 = vrot.slane %v895_v57, %v872_v49 }
 0x38d   :  { %875 = vbcast.lane.c.b16.xlu0 %v873_v50, 256  ;;  %923 = vbcast.lane.c.b16.xlu1 %v921_v56, 256 }
 0x391   :  { %882 = vbcast.lane.c.b16.xlu0 %v880_v48, 256  ;;  %937 = vbcast.lane.c.b16.xlu1 %v935_v9, 256 }
 0x395   :  { %1223 = vrot.lane.b32.xlu0 %v1639_v17, %s1528_s21  ;;  %902 = vbcast.lane.c.b16.xlu1 %v900_v58, 256 }
 0x399   :  { %916 = vbcast.lane.c.b16.xlu1 %v914_v59, 256 }
 0x39d   :  { %930 = vbcast.lane.c.b16.xlu1 %v928_v12, 256 }
 0x3a1   :  { %944 = vbcast.lane.c.b16.xlu1 %v942_v62, 256 }
 0x3e6   :  { %v831_v18 = vpop.permute.xlu1 %830  ;;  %v848_v63 = vpop.permute.xlu0 %847 }
 0x3e7   :  { %v946_v17 = vmul.bf16 %v831_v18, %v1665_v46  ;;  %v948_v11 = vmul.bf16 %v848_v63, %v1670_v52 }
 0x3e9   :  { %v962_v14 = vunpack.c.l.bf16 %v946_v17  ;;  %v964_v19 = vunpack.c.l.bf16 %v948_v11 }
 0x3ea   :  { %v841_v42 = vpop.permute.xlu1 %840  ;;  %v862_v3 = vpop.permute.xlu0 %861 }
 0x3eb   :  { %v947_v20 = vmul.bf16 %v841_v42, %v1668_v51  ;;  %v978_v38 = vsel %vm541_vm2, %v962_v14, 0.0  ;;  %v950_v23 = vmul.bf16 %v862_v3, %v1681_v6  ;;  %v992_v51 = vsel %vm541_vm2, %v964_v19, 0.0 }
 0x3ec   :  { %v993_v40 = vrot.slane %v992_v51, 4 }
 0x3ed   :  { %v963_v25 = vunpack.c.l.bf16 %v947_v20  ;;  %v966_v35 = vunpack.c.l.bf16 %v950_v23 }
 0x3ee   :  { %v855_v0 = vpop.permute.xlu0 %854 }
 0x3ef   :  { %v949_v46 = vmul.bf16 %v855_v0, %v1687_v15 }
 0x3f1   :  { %v965_v36 = vunpack.c.l.bf16 %v949_v46 }
 0x3f2   :  { %v869_v31 = vpop.permute.xlu0 %868 }
 0x3f3   :  { %v951_v21 = vmul.bf16 %v869_v31, %v1692_v24  ;;  %v1006_v24 = vsel %vm541_vm2, %v966_v35, 0.0  ;;  %v999_v56 = vsel %vm541_vm2, %v965_v36, 0.0 }
 0x3f4   :  { %v1000_v18 = vrot.slane %v999_v56, 4  ;;  %v1007_v0 = vrot.slane %v1006_v24, 4 }
 0x3f5   :  { %v967_v55 = vunpack.c.l.bf16 %v951_v21 }
 0x3f6   :  { %v1001_v11 = vadd.f32 %v1000_v18, %v999_v56 }
 0x3fb   :  { %v910_v1 = vpop.permute.xlu1 %909  ;;  %v893_v8 = vpop.permute.xlu0 %892 }
 0x3fc   :  { %v954_v22 = vmul.bf16 %v893_v8, %v1717_v2  ;;  %v956_v30 = vmul.bf16 %v910_v1, %v1729_v26  ;;  %v985_v2 = vsel %vm541_vm2, %v963_v25, 0.0  ;;  %v1013_v1 = vsel %vm541_vm2, %v967_v55, 0.0 }
 0x3fd   :  { %v986_v47 = vrot.slane %v985_v2, 4  ;;  %v1014_v14 = vrot.slane %v1013_v1, 4 }
 0x3fe   :  { %v970_v34 = vunpack.c.l.bf16 %v954_v22  ;;  %v972_v37 = vunpack.c.l.bf16 %v956_v30 }
 0x3ff   :  { %v924_v61 = vpop.permute.xlu1 %923  ;;  %v876_v16 = vpop.permute.xlu0 %875  ;;  %v987_v62 = vadd.f32 %v986_v47, %v985_v2  ;;  %v1015_v35 = vadd.f32 %v1014_v14, %v1013_v1 }
 0x400   :  { %v958_v43 = vmul.bf16 %v924_v61, %v1741_v41  ;;  %v1034_v49 = vsel %vm541_vm2, %v970_v34, 0.0  ;;  %v1002_v34 = vrot.slane %v1001_v11, 2 }
 0x401   :  { %v1035_v57 = vrot.slane %v1034_v49, 4 }
 0x402   :  { %v974_v59 = vunpack.c.l.bf16 %v958_v43 }
 0x403   :  { %v1810_v5 = vpop.permute.xlu1 %937  ;;  %v883_v6 = vpop.permute.xlu0 %882  ;;  %v1036_v17 = vadd.f32 %v1035_v57, %v1034_v49  ;;  %v1003_v49 = vadd.f32 %v1002_v34, %v1001_v11 }
 0x404   :  { %v953_v50 = vmul.bf16 %v883_v6, %v1761_v4  ;;  %v960_v12 = vmul.bf16 %v1810_v5, %v1734_v32  ;;  %v994_v4 = vadd.f32 %v993_v40, %v992_v51  ;;  %v988_v5 = vrot.slane %v987_v62, 2 }
 0x405   :  { %v1037_v30 = vrot.slane %v1036_v17, 2  ;;  %v1008_v51 = vadd.f32 %v1007_v0, %v1006_v24 }
 0x406   :  { %v969_v42 = vunpack.c.l.bf16 %v953_v50  ;;  %v976_v32 = vunpack.c.l.bf16 %v960_v12  ;;  %v1016_v50 = vrot.slane %v1015_v35, 2 }
 0x407   :  { %v903_v7 = vpop.permute.xlu1 %902  ;;  %v1038_v43 = vadd.f32 %v1037_v30, %v1036_v17 }
 0x408   :  { %v955_v54 = vmul.bf16 %v903_v7, %v1724_v13  ;;  %v979_v13 = vrot.slane %v978_v38, 4  ;;  %v1027_v20 = vsel %vm541_vm2, %v969_v42, 0.0  ;;  %v1017_v1 = vadd.f32 %v1016_v50, %v1015_v35 }
 0x40a   :  { %v971_v52 = vunpack.c.l.bf16 %v955_v54  ;;  %v980_v45 = vadd.f32 %v979_v13, %v978_v38  ;;  %v995_v54 = vrot.slane %v994_v4, 2  ;;  %v989_v13 = vadd.f32 %v988_v5, %v987_v62 }
 0x40b   :  { %v917_v10 = vpop.permute.xlu1 %916 }
 0x40c   :  { %v957_v33 = vmul.bf16 %v917_v10, %v1753_v60  ;;  %v1041_v15 = vsel %vm541_vm2, %v971_v52, 0.0  ;;  %v952_v60 = vmul.bf16 %v876_v16, %v1697_v29  ;;  %v981_v63 = vrot.slane %v980_v45, 2 }
 0x40d   :  { %v1042_v48 = vrot.slane %v1041_v15, 4  ;;  %v1062_v10 = vsel %vm541_vm2, %v974_v59, 0.0  ;;  %v1028_v52 = vrot.slane %v1027_v20, 4  ;;  %v996_v40 = vadd.f32 %v995_v54, %v994_v4 }
 0x40e   :  { %v973_v39 = vunpack.c.l.bf16 %v957_v33  ;;  %v968_v58 = vunpack.c.l.bf16 %v952_v60  ;;  %v1063_v25 = vrot.slane %v1062_v10, 4  ;;  %v1076_v33 = vsel %vm541_vm2, %v976_v32, 0.0 }
 0x40f   :  { %v931_v27 = vpop.permute.xlu1 %930  ;;  %v1043_v3 = vadd.f32 %v1042_v48, %v1041_v15  ;;  %v990_v47 = vrot.slane %v989_v13, 1  ;;  %v997_v59 = vrot.slane %v996_v40, 1  ;;  %v1039_v4 = vrot.slane %v1038_v43, 1 }
 0x410   :  { %v959_v26 = vmul.bf16 %v931_v27, %v1731_v28  ;;  %v1048_v28 = vsel %vm541_vm2, %v972_v37, 0.0  ;;  %v1055_v9 = vsel %vm541_vm2, %v973_v39, 0.0  ;;  %v1020_v8 = vsel %vm541_vm2, %v968_v58, 0.0 }
 0x411   :  { %v1056_v61 = vrot.slane %v1055_v9, 4  ;;  %v1049_v31 = vrot.slane %v1048_v28, 4  ;;  %v1044_v16 = vrot.slane %v1043_v3, 2  ;;  %v1021_v23 = vrot.slane %v1020_v8, 4 }
 0x412   :  { %v975_v29 = vunpack.c.l.bf16 %v959_v26  ;;  %v982_v27 = vadd.f32 %v981_v63, %v980_v45  ;;  %v1064_v39 = vadd.f32 %v1063_v25, %v1062_v10  ;;  %v1077_v26 = vrot.slane %v1076_v33, 4 }
 0x413   :  { %v945_v44 = vpop.permute.xlu1 %944  ;;  %v1057_v19 = vadd.f32 %v1056_v61, %v1055_v9  ;;  %v1050_v38 = vadd.f32 %v1049_v31, %v1048_v28  ;;  %v1045_v2 = vadd.f32 %v1044_v16, %v1043_v3  ;;  %v1022_v15 = vadd.f32 %v1021_v23, %v1020_v8 }
 0x414   :  { %v961_v41 = vmul.bf16 %v945_v44, %v1748_v53  ;;  %v1069_v7 = vsel %vm541_vm2, %v975_v29, 0.0  ;;  %v983_v60 = vrot.slane %v982_v27, 1  ;;  %v1029_v44 = vadd.f32 %v1028_v52, %v1027_v20 }
 0x415   :  { %v1070_v22 = vrot.slane %v1069_v7, 4  ;;  %v1058_v36 = vrot.slane %v1057_v19, 2  ;;  %v1051_v37 = vrot.slane %v1050_v38, 2  ;;  %v1009_v45 = vrot.slane %v1008_v51, 2 }
 0x416   :  { %v977_v53 = vunpack.c.l.bf16 %v961_v41  ;;  %v1046_v56 = vrot.slane %v1045_v2, 1  ;;  %v1023_v29 = vrot.slane %v1022_v15, 2  ;;  %v1065_v41 = vrot.slane %v1064_v39, 2 }
 0x417   :  { %v1071_v21 = vadd.f32 %v1070_v22, %v1069_v7  ;;  %v1059_v55 = vadd.f32 %v1058_v36, %v1057_v19  ;;  %v1052_v9 = vadd.f32 %v1051_v37, %v1050_v38  ;;  %v1078_v57 = vadd.f32 %v1077_v26, %v1076_v33 }
 0x418   :  { %v1083_v46 = vsel %vm541_vm2, %v977_v53, 0.0  ;;  %v984_v12 = vadd.f32 %v983_v60, %v982_v27  ;;  %v1030_v62 = vrot.slane %v1029_v44, 2  ;;  %v1010_v18 = vadd.f32 %v1009_v45, %v1008_v51 }
 0x419   :  { %v1084_v6 = vrot.slane %v1083_v46, 4  ;;  %v1072_v48 = vrot.slane %v1071_v21, 2  ;;  %v991_v42 = vadd.f32 %v990_v47, %v989_v13  ;;  %v1004_v63 = vrot.slane %v1003_v49, 1 }
 0x41a   :  { %v1047_v61 = vadd.f32 %v1046_v56, %v1045_v2  ;;  %v1060_v0 = vrot.slane %v1059_v55, 1  ;;  %v1053_v53 = vrot.slane %v1052_v9, 1  ;;  %v1024_v17 = vadd.f32 %v1023_v29, %v1022_v15 }
 0x41b   :  { %v1085_v28 = vadd.f32 %v1084_v6, %v1083_v46  ;;  %v1073_v31 = vadd.f32 %v1072_v48, %v1071_v21  ;;  %v1066_v8 = vadd.f32 %v1065_v41, %v1064_v39  ;;  %v1079_v10 = vrot.slane %v1078_v57, 2 }
 0x41c   :  { %v998_v5 = vadd.f32 %v997_v59, %v996_v40  ;;  %v1040_v11 = vadd.f32 %v1039_v4, %v1038_v43  ;;  %v1031_v14 = vadd.f32 %v1030_v62, %v1029_v44  ;;  %v1011_v20 = vrot.slane %v1010_v18, 1  ;;  %v1224_v62 = vpop.permute.xlu0 %1223 }
 0x41d   :  { %v1086_v7 = vrot.slane %v1085_v28, 2  ;;  %v1101_v54 = vsel %vm632_vm3, %v991_v42, %v984_v12  ;;  %v1005_v16 = vadd.f32 %v1004_v63, %v1003_v49  ;;  %v1018_v19 = vrot.slane %v1017_v1, 1 }
 0x41e   :  { %v1166_v22 = vsel %vm632_vm3, %v1047_v61, %v1040_v11  ;;  %v1061_v38 = vadd.f32 %v1060_v0, %v1059_v55  ;;  %v1074_v23 = vrot.slane %v1073_v31, 1  ;;  %v1054_v46 = vadd.f32 %v1053_v53, %v1052_v9 }
 0x41f   :  { %v1087_v25 = vadd.f32 %v1086_v7, %v1085_v28  ;;  %v1025_v27 = vrot.slane %v1024_v17, 1  ;;  %v1067_v30 = vrot.slane %v1066_v8, 1  ;;  %v1080_v52 = vadd.f32 %v1079_v10, %v1078_v57  ;;  %v1320_v10 = vld [vmem:[%s1885_s9] ss:$0 sm:$0xff] }
 0x420   :  { %v1032_v33 = vrot.slane %v1031_v14, 1  ;;  %v1102_v51 = vsel %vm634_vm4, %v998_v5, %v1101_v54  ;;  %v1167_v34 = vsel %vm634_vm4, %v1054_v46, %v1166_v22  ;;  %v1019_v35 = vadd.f32 %v1018_v19, %v1017_v1 }
 0x421   :  { %v1103_v13 = vsel %vm636_vm5, %v1005_v16, %v1102_v51  ;;  %v1075_v2 = vadd.f32 %v1074_v23, %v1073_v31  ;;  %v1088_v36 = vrot.slane %v1087_v25, 1  ;;  %v1168_v21 = vsel %vm636_vm5, %v1061_v38, %v1167_v34 }
 0x422   :  { %v1012_v6 = vadd.f32 %v1011_v20, %v1010_v18  ;;  %v1026_v37 = vadd.f32 %v1025_v27, %v1024_v17  ;;  %v1068_v15 = vadd.f32 %v1067_v30, %v1066_v8  ;;  %v1081_v39 = vrot.slane %v1080_v52, 1  ;;  %v1319_v17 = vld [vmem:[%s1884_s8] ss:$0 sm:$0xff]  ;;  %s1538_s8 = smov [#allocation11]  }
 0x423   :  { %v1033_v26 = vadd.f32 %v1032_v33, %v1031_v14  ;;  %v1089_v44 = vadd.f32 %v1088_v36, %v1087_v25  ;;  %v1537_v36 = vmov -1.0   ;;  %s1289_s9 = sshll.u32 %s1538_s8, 4  ;;  %s1290_s9 = int_to_ptr.vmem [resolvable:$true] %s1289_s9 }
 0x424   :  { %v1104_v40 = vsel %vm638_vm6, %v1012_v6, %v1103_v13  ;;  %v1169_v60 = vsel %vm638_vm6, %v1068_v15, %v1168_v21  ;;  %v1082_v47 = vadd.f32 %v1081_v39, %v1080_v52  ;;  %s1498_s23 = scalar_lea.vmem %s1290_s9, 128  ;;  %p1503_p12 = scmp.lt.s32.totalorder %s1290_s9, %s1290_s9 }
 0x425   :  { %v1105_v43 = vsel %vm640_vm7, %v1019_v35, %v1104_v40  ;;  %v1170_v45 = vsel %vm640_vm7, %v1075_v2, %v1169_v60  ;;  %p1499_p11 = scmp.ne.s32.totalorder %s1290_s9, %s1498_s23  ;;  %p1504_p13 = scmp.lt.s32.totalorder %s1498_s23, %s1498_s23 }
 0x426   :  { %v1106_v49 = vsel %vm642_vm8, %v1026_v37, %v1105_v43  ;;  %v1171_v55 = vsel %vm642_vm8, %v1082_v47, %v1170_v45 }
 0x427   :  { %v1107_v50 = vsel %vm644_vm9, %v1033_v26, %v1106_v49  ;;  %v1172_v48 = vsel %vm644_vm9, %v1089_v44, %v1171_v55  ;;  %p1505_p0 = por %p1504_p13, %p1503_p12 }
 0x429   :  { %p1506_p1 = pnand %p1505_p0, %p1499_p11 }
 0x430   :  { %v1845_v24 = vpop.f32.mrf.mxu0 }
 0x431   :  { %v1150_v56 = vadd.f32 %v1845_v24, %v1107_v50 }
 0x432   :  { %v1361_v58 = vpop.f32.mrf.mxu0 }
 0x433   :  { %v1219_v41 = vsel %vm541_vm2, %v1150_v56, 0.0 }
 0x434   :  { %v1152_v3 = vpop.f32.mrf.mxu0 }
 0x436   :  { %v1362_v32 = vpop.f32.mrf.mxu0 }
 0x445   :  { %v1213_v28 = vpop.f32.mrf.mxu1 }
 0x446   :  { %v1214_v9 = vadd.f32 %v1213_v28, %v1172_v48 }
 0x447   :  { %v1367_v29 = vpop.f32.mrf.mxu1 }
 0x448   :  { %v1220_v57 = vsel %vm541_vm2, %v1214_v9, 0.0 }
 0x449   :  { %v1221_v58 = vadd.f32 %v1220_v57, %v1219_v41  ;;  %v1216_v59 = vpop.f32.mrf.mxu1 }
 0x44b   :  { %v1222_v12 = vmul.f32 0.5, %v1221_v58  ;;  %v1368_v4 = vpop.f32.mrf.mxu1 }
 0x44d   :  { %v1226_v18 = vadd.f32 %v1224_v62, %v1222_v12 }
 0x44f   :  { %v1227_v42 = vsel %vm541_vm2, %v1226_v18, 0.0 }
 0x450   :  { %1228 = vadd.xlane.f32.xlu1 %v1227_v42 }
 0x4d9   :  { %v1229_v24 = vpop.xlane.xlu1 %1228 }
 0x4da   :  { %v1231_v63 = vmul.f32 0.03125, %v1229_v24 }
 0x4dc   :  { %v1232_v1 = vsub.f32 %v1226_v18, %v1231_v63 }
 0x4de   :  { %v1233_v3 = vmul.f32 %v1232_v1, %v1232_v1 }
 0x4e0   :  { %v1234_v61 = vsel %vm541_vm2, %v1233_v3, 0.0 }
 0x4e1   :  { %1235 = vadd.xlane.f32.xlu0 %v1234_v61 }
 0x56a   :  { %v1236_v0 = vpop.xlane.xlu0 %1235 }
 0x56b   :  { %v1237_v31 = vmul.f32 0.03125, %v1236_v0 }
 0x56d   :  { %v1238_v7 = vadd.f32 1e-05, %v1237_v31 }
 0x56f   :  { %1392 = vrsqrt.f32 %v1238_v7 }
 0x57c   :  { %v1393_v53 = vpop.eup %1392 }
 0x57d   :  { %v1240_v8 = vmul.f32 %v1393_v53, %v1232_v1 }
 0x57f   :  { %v1247_v32 = vmul.f32 %v1319_v17, %v1240_v8 }
 0x581   :  { %v1254_v5 = vadd.f32 %v1320_v10, %v1247_v32 }
 0x583   :  { %v1256_v11 = vmul.f32 0.70710677, %v1254_v5  ;;  %v1255_v37 = vmul.f32 0.5, %v1254_v5 }
 0x585   :  { %v1259_v14 = vand.u32 2147483647, %v1256_v11  ;;  %vm1257_vm14 = vcmp.ge.f32.partialorder %v1256_v11, 0.0 }
 0x586   :  { %v1258_v21 = vsel %vm1257_vm14, 1.0, %v1537_v36 }
 0x587   :  { %v1260_v20 = vmul.f32 0.3275911, %v1259_v14  ;;  %v1273_v16 = vsub.f32 0.0, %v1259_v14 }
 0x589   :  { %v1261_v54 = vadd.f32 1.0, %v1260_v20  ;;  %v1274_v19 = vmul.f32 %v1273_v16, %v1259_v14 }
 0x58b   :  { %1394 = vrcp.f32 %v1261_v54  ;;  %v1275_v23 = vmul.f32 1.442695, %v1274_v19 }
 0x58d   :  { %1396 = vpow2.f32 %v1275_v23 }
 0x598   :  { %v1395_v22 = vpop.eup %1394 }
 0x599   :  { %v1264_v38 = vmul.f32 1.0614054, %v1395_v22 }
 0x59a   :  { %v1397_v34 = vpop.eup %1396 }
 0x59b   :  { %v1265_v25 = vadd.f32 -1.4531521, %v1264_v38 }
 0x59d   :  { %v1266_v46 = vmul.f32 %v1395_v22, %v1265_v25 }
 0x59f   :  { %v1267_v27 = vadd.f32 1.4214138, %v1266_v46 }
 0x5a1   :  { %v1268_v30 = vmul.f32 %v1395_v22, %v1267_v27 }
 0x5a3   :  { %v1269_v52 = vadd.f32 -0.28449672, %v1268_v30 }
 0x5a5   :  { %v1270_v33 = vmul.f32 %v1395_v22, %v1269_v52 }
 0x5a7   :  { %v1271_v51 = vadd.f32 0.2548296, %v1270_v33 }
 0x5a9   :  { %v1272_v13 = vmul.f32 %v1395_v22, %v1271_v51 }
 0x5ab   :  { %v1277_v35 = vmul.f32 %v1397_v34, %v1272_v13 }
 0x5ad   :  { %v1278_v2 = vsub.f32 1.0, %v1277_v35 }
 0x5af   :  { %v1279_v6 = vmul.f32 %v1278_v2, %v1258_v21 }
 0x5b1   :  { %v1280_v15 = vadd.f32 1.0, %v1279_v6 }
 0x5b3   :  { %v1281_v39 = vmul.f32 %v1280_v15, %v1255_v37 }
 0x5b5   :  { %1282 = vst.msk [vmem:[#allocation11] sm:$0xff] %vm541_vm2, %v1281_v39 }
 0x5b6   :  { %1509 = shalt.err (!%p1506_p1)
}
 0x5b7   :  { %1292 = dma.vmem_to_hbm [thread:$0]  %s1290_s9, 128, %s1886_s10, [#allocation4]  }
 0x5b8   :  { %1524 = dma.done.wait [#allocation4], 128  }
 0x5b9   :  { %1525 = vsyncadd [#allocation4], 4294967168 }
 0x5ba   :  { %1296 = vsyncpa [#allocation3], 1 }
 0x5bb   :  { %1297 = vsyncpa [#allocation6], 1 }
 0x5bc   :  { %1298 = vsyncpa [#allocation9], 1 }
 0x5bd   :  { %1299 = vsyncpa [#allocation4], 1 }

</bundles_post_ra>
